<compile_context>
chip_gen: v7x
topology: tpu7x:2x2x1
jax: 0.10.0
libtpu: 0.0.40
codegen_flags: <defaults>
</compile_context>

<pallas_src>
import numpy as np
import jax
import jax.numpy as jnp
from jax.experimental import pallas as pl
from jax.experimental.pallas import tpu as pltpu


# --------------------------------------------------------------------------- #
# small helpers
# --------------------------------------------------------------------------- #
def _round_up(a, b):
    return ((a + b - 1) // b) * b


def _cdiv(a, b):
    return -(-a // b)


def _largest_divisor_leq(n, cap):
    cap = max(1, min(int(cap), int(n)))
    for d in range(cap, 0, -1):
        if n % d == 0:
            return d
    return 1


def _vmem_capacity_bytes():
    """Physical VMEM of the current TPU generation (fallback: v7x's 64 MiB)."""
    try:
        info = pltpu.get_tpu_info()
        cap = getattr(info, "vmem_capacity_bytes", None)
        if cap:
            return int(cap)
    except Exception:
        pass
    return 64 << 20


def _choose_tiles(N, C0, Cout, HW, x_item, out_item, w_bytes, budget):
    """Pick (nb, lane_tile): nb images per grid step x lane tile, sized so the
    double-buffered in/out tiles + weight + f32 working copies fit `budget`."""
    fixed = 2 * w_bytes + 4 * 4 * C0 + (2 << 20)          # dbl-buffered weight + scale/shift + slack
    per_lane_io = 2 * (C0 * x_item + Cout * out_item)      # double-buffered x/out tiles
    per_lane_work = 4 * (C0 + Cout)                        # f32 BN/ReLU + accumulator working set
    avail = max(budget - fixed, 128 * (per_lane_io + per_lane_work))
    max_lanes = max(int(avail // (per_lane_io + per_lane_work)), 128)

    if HW <= max_lanes:
        # small/medium feature map: full spatial extent per step (no padding,
        # valid for any HW), block several images per step to amortize the
        # ~0.35us/step overhead.  nb divides N so no block ever goes OOB.
        tile = HW
        nb = _largest_divisor_leq(N, min(8, max(1, max_lanes // HW)))
        if N >= 2 and _cdiv(N, nb) < 2:
            # guarantee >=2 grid steps so v7x's two TensorCores both get work
            nb = _largest_divisor_leq(N, max(N // 2, 1))
        # TODO(synk): for N == 1 with a single spatial tile the grid has one
        # step and half a v7x chip idles; a Cout split axis would fix that.
    else:
        # large feature map: one image per step, big multiple-of-128 lane tile.
        nb = 1
        tile = max(128, min((max_lanes // 128) * 128, 8192))
        # If tile does not divide HW, the last lane block relies on documented
        # Pallas OOB semantics (reads unspecified, writes dropped) — correct,
        # and avoids the jnp.pad / output-slice extra HBM passes.
    return nb, tile


# --------------------------------------------------------------------------- #
# kernels
# --------------------------------------------------------------------------- #
def _bn_relu_matmul_kernel(x_ref, scale_ref, shift_ref, w_ref, o_ref):
    # x_ref: (nb, C0, T) in/bf16   scale/shift: (C0, 1) f32
    # w_ref: (Cout, C0) bf16       o_ref: (nb, Cout, T) out dtype
    w = w_ref[...]
    scale = scale_ref[...]
    shift = shift_ref[...]
    nb = x_ref.shape[0]
    for i in range(nb):                                   # static, small (<=8)
        xi = x_ref[i].astype(jnp.float32)                 # (C0, T) upcast
        xi = jnp.maximum(xi * scale + shift, 0.0)         # eval-BN + ReLU (f32)
        yi = jnp.dot(w, xi.astype(w.dtype),               # one MXU pass / image
                     preferred_element_type=jnp.float32)
        o_ref[i] = yi.astype(o_ref.dtype)                 # lane-dense store


def _matmul_only_kernel(x_ref, w_ref, o_ref):             # only_conv=True path
    w = w_ref[...]
    nb = x_ref.shape[0]
    for i in range(nb):
        yi = jnp.dot(w, x_ref[i].astype(w.dtype),
                     preferred_element_type=jnp.float32)
        o_ref[i] = yi.astype(o_ref.dtype)


# --------------------------------------------------------------------------- #
# forward
# --------------------------------------------------------------------------- #
def condensing_conv_forward(x, index, gamma, beta, running_mean, running_var,
                            weight, *, groups, only_conv=False, eps=1e-5,
                            mxu_dtype=jnp.bfloat16, out_dtype=None):
    """CondensingConv.forward.  x: (N, C_orig, H, W), NCHW, any float dtype
    (bf16 recommended for a bandwidth-bound layer)."""
    N, C0, H, W = x.shape
    Cout, cg_in = int(weight.shape[0]), int(weight.shape[1])
    Cin = int(index.shape[0])
    assert Cin == cg_in * groups and Cout % groups == 0
    cg_out = Cout // groups
    HW = H * W
    out_dtype = jnp.dtype(x.dtype if out_dtype is None else out_dtype)
    mxu_dtype = jnp.dtype(mxu_dtype)

    # ---- glue: fuse groups + channel shuffle + channel gather into one weight
    w_g = jnp.asarray(weight).reshape(Cout, cg_in)
    w_g = w_g.reshape(groups, cg_out, cg_in).astype(jnp.float32)
    eye = jnp.eye(groups, dtype=jnp.float32)
    # row k*G + g (shuffled order), col h*cg_in + c (gathered space), blk-diag
    w_perm = jnp.einsum('gh,gkc->kghc', eye, w_g).reshape(Cout, Cin)
    idx = jnp.asarray(index, jnp.int32)
    # fold index_select: scatter-add columns onto original channels (the gather
    # is linear so it commutes into the weight; duplicate columns sum correctly)
    w_eff = jnp.zeros((Cout, C0), jnp.float32).at[:, idx].add(w_perm)
    w_eff = w_eff.astype(mxu_dtype)
    # TODO(synk): pad C0/Cout to multiples of 16 (bf16 sublane packing) when the
    # adjacent layers can consume the padded channel layout without an extra
    # HBM pass.

    # ---- glue: fold eval-mode BN into per-ORIGINAL-channel scale / shift -----
    # (CondensingConv copies identical BN params to every gathered copy of the
    #  same original channel, so BN/ReLU can be applied per original channel
    #  before the gather-folded matmul.)
    if not only_conv:
        scale_c = (jnp.asarray(gamma, jnp.float32)
                   / jnp.sqrt(jnp.asarray(running_var, jnp.float32) + eps))
        shift_c = jnp.asarray(beta, jnp.float32) - jnp.asarray(running_mean, jnp.float32) * scale_c
        scale_o = jnp.ones((C0,), jnp.float32).at[idx].set(scale_c).reshape(C0, 1)
        shift_o = jnp.zeros((C0,), jnp.float32).at[idx].set(shift_c).reshape(C0, 1)

    # ---- glue: flatten spatial dim (free reshape, no pad / no extra HBM pass)
    xf = jnp.asarray(x).reshape(N, C0, HW)

    x_item = jnp.dtype(xf.dtype).itemsize
    o_item = out_dtype.itemsize
    w_bytes = Cout * C0 * mxu_dtype.itemsize

    cap = _vmem_capacity_bytes()
    budget = min(40 << 20, (cap * 7) // 16)      # ~28 MiB on v7x, ~40 MiB v5e/v6e
    nb, tile = _choose_tiles(N, C0, Cout, HW, x_item, o_item, w_bytes, budget)

    tile_pad = _round_up(tile, 128)
    req = (2 * nb * C0 * tile_pad * x_item          # double-buffered x tiles
           + 2 * nb * Cout * tile_pad * o_item      # double-buffered out tiles
           + 2 * w_bytes + 4 * 4 * C0               # weight + scale/shift
           + 4 * (C0 + Cout) * tile_pad)            # f32 working copies
    vmem_limit = int(min(cap * 3 // 4, max(req + (8 << 20), 32 << 20)))

    grid = (_cdiv(N, nb), _cdiv(HW, tile))
    x_spec = pl.BlockSpec((nb, C0, tile), lambda n, t: (n, 0, t))
    w_spec = pl.BlockSpec((Cout, C0), lambda n, t: (0, 0))
    out_spec = pl.BlockSpec((nb, Cout, tile), lambda n, t: (n, 0, t))

    cost = pl.CostEstimate(
        flops=2 * N * Cout * C0 * HW,
        transcendentals=0,
        bytes_accessed=int(xf.size * x_item + N * Cout * HW * o_item
                           + w_bytes + 8 * C0))
    cparams = pltpu.CompilerParams(
        dimension_semantics=("parallel", "parallel"),
        vmem_limit_bytes=vmem_limit)

    out_shape = jax.ShapeDtypeStruct((N, Cout, HW), out_dtype)

    if only_conv:
        out = pl.pallas_call(
            _matmul_only_kernel,
            out_shape=out_shape,
            grid_spec=pltpu.PrefetchScalarGridSpec(
                num_scalar_prefetch=0, grid=grid,
                in_specs=[x_spec, w_spec], out_specs=out_spec),
            compiler_params=cparams, cost_estimate=cost,
        )(xf, w_eff)
    else:
        s_spec = pl.BlockSpec((C0, 1), lambda n, t: (0, 0))
        out = pl.pallas_call(
            _bn_relu_matmul_kernel,
            out_shape=out_shape,
            grid_spec=pltpu.PrefetchScalarGridSpec(
                num_scalar_prefetch=0, grid=grid,
                in_specs=[x_spec, s_spec, s_spec, w_spec], out_specs=out_spec),
            compiler_params=cparams, cost_estimate=cost,
        )(xf, scale_o, shift_o, w_eff)

    # channels are already in shuffled order; reshape is free (no slicing pass)
    return out.reshape(N, Cout, H, W)


# --------------------------------------------------------------------------- #
# synthetic "condensed model" construction + pure-JAX reference
# --------------------------------------------------------------------------- #
def build_condensed_params(key, *, C0, Cout, groups, condense_factor):
    """Replicates CondensingConv.__init__ from a synthetic 'model' (1x1 conv)."""
    in_channels = C0 * groups // condense_factor
    cg_in = in_channels // groups
    cg_out = Cout // groups

    k1, k2, k3, k4, k5 = jax.random.split(key, 5)
    model_weight = jax.random.normal(k1, (Cout, C0), jnp.float32) * 0.1
    model_gamma = jax.random.normal(k2, (C0,), jnp.float32) * 0.1 + 1.0
    model_beta = jax.random.normal(k3, (C0,), jnp.float32) * 0.1
    model_mean = jax.random.normal(k4, (C0,), jnp.float32) * 0.1
    model_var = jax.random.uniform(k5, (C0,), jnp.float32, minval=0.5, maxval=1.5)

    # deterministic pruning mask: group i keeps exactly cg_in channels
    mask = np.zeros((groups, C0), np.int32)
    for i in range(groups):
        kept = sorted({(i + condense_factor * t) % C0 for t in range(cg_in)})
        assert len(kept) == cg_in
        mask[i, kept] = 1

    mw = np.asarray(model_weight)
    mg, mb = np.asarray(model_gamma), np.asarray(model_beta)
    mm, mv = np.asarray(model_mean), np.asarray(model_var)

    cond_w = np.zeros((Cout, cg_in, 1, 1), np.float32)
    cond_gamma = np.zeros((in_channels,), np.float32)
    cond_beta = np.zeros((in_channels,), np.float32)
    cond_mean = np.zeros((in_channels,), np.float32)
    cond_var = np.ones((in_channels,), np.float32)
    index = np.zeros((in_channels,), np.int32)

    idx = 0
    for i in range(groups):
        for j in range(C0):
            if idx < cg_in * (i + 1) and mask[i, j] == 1:
                for k in range(cg_out):
                    idx_i = int(k + i * cg_out)
                    idx_j = idx % cg_in
                    cond_w[idx_i, idx_j, 0, 0] = mw[int(i + k * groups), j]
                    cond_gamma[idx] = mg[j]
                    cond_beta[idx] = mb[j]
                    cond_mean[idx] = mm[j]
                    cond_var[idx] = mv[j]
                index[idx] = j
                idx += 1
    assert idx == in_channels
    return (jnp.asarray(index), jnp.asarray(cond_gamma), jnp.asarray(cond_beta),
            jnp.asarray(cond_mean), jnp.asarray(cond_var), jnp.asarray(cond_w))


def reference_forward(x, index, gamma, beta, mean, var, weight, *, groups,
                      only_conv=False, eps=1e-5):
    """Pure-JAX reference matching the PyTorch forward (eval-mode BN)."""
    xg = jnp.take(x, index, axis=1)
    if not only_conv:
        inv = 1.0 / jnp.sqrt(var + eps)
        xg = (xg - mean[None, :, None, None]) * inv[None, :, None, None] \
             * gamma[None, :, None, None] + beta[None, :, None, None]
        xg = jnp.maximum(xg, 0.0)
    N, Cin, H, W = xg.shape
    Cout = weight.shape[0]
    cg_in = Cin // groups
    cg_out = Cout // groups
    xr = xg.reshape(N, groups, cg_in, H * W)
    wr = weight.reshape(groups, cg_out, cg_in)
    y = jnp.einsum("goc,ngcs->ngos", wr, xr).reshape(N, Cout, H, W)
    # ShuffleLayer
    y = y.reshape(N, groups, cg_out, H, W).transpose(0, 2, 1, 3, 4)
    return y.reshape(N, Cout, H, W)


# --------------------------------------------------------------------------- #
if __name__ == "__main__":
    # synthetic "model": conv.in_channels=8, out_channels=8, groups=2,
    # condense_factor=2, kernel_size=1, stride=1, padding=0
    C0, Cout, groups, condense_factor = 8, 8, 2, 2
    key = jax.random.PRNGKey(0)
    kp, kx1, kx2 = jax.random.split(key, 3)
    index, gamma, beta, mean, var, weight = build_condensed_params(
        kp, C0=C0, Cout=Cout, groups=groups, condense_factor=condense_factor)

    # case 1: 16x16 feature map, bf16 activations in, bf16 out (bandwidth path)
    N, H, W = 2, 16, 16
    x = jax.random.normal(kx1, (N, C0, H, W), jnp.float32).astype(jnp.bfloat16)
    out = jax.block_until_ready(
        condensing_conv_forward(x, index, gamma, beta, mean, var, weight,
                                groups=groups))
    ref = reference_forward(x.astype(jnp.float32), index, gamma, beta, mean,
                            var, weight, groups=groups)
    assert out.shape == (N, Cout, H, W), out.shape
    assert out.dtype == jnp.bfloat16, out.dtype
    np.testing.assert_allclose(np.asarray(out, np.float32), np.asarray(ref),
                               rtol=2e-2, atol=2e-2)

    # case 2: non-128-multiple spatial size (14x14), batch blocking, f32 output
    N2, H2, W2 = 4, 14, 14
    x2 = jax.random.normal(kx2, (N2, C0, H2, W2), jnp.float32).astype(jnp.bfloat16)
    out2 = jax.block_until_ready(
        condensing_conv_forward(x2, index, gamma, beta, mean, var, weight,
                                groups=groups, out_dtype=jnp.float32))
    ref2 = reference_forward(x2.astype(jnp.float32), index, gamma, beta, mean,
                             var, weight, groups=groups)
    assert out2.shape == (N2, Cout, H2, W2), out2.shape
    np.testing.assert_allclose(np.asarray(out2), np.asarray(ref2),
                               rtol=2e-2, atol=2e-2)

    # case 3: only_conv=True path
    out3 = jax.block_until_ready(
        condensing_conv_forward(x, index, gamma, beta, mean, var, weight,
                                groups=groups, only_conv=True))
    ref3 = reference_forward(x.astype(jnp.float32), index, gamma, beta, mean,
                             var, weight, groups=groups, only_conv=True)
    np.testing.assert_allclose(np.asarray(out3, np.float32), np.asarray(ref3),
                               rtol=2e-2, atol=2e-2)

    print("KERNEL_OK")
</pallas_src>

<mosaic_0001>
module attributes {stable_mosaic.version = 11 : i64} {
  func.func @_bn_relu_matmul_kernel(%arg0: i32, %arg1: i32, %arg2: memref<1x8x256xbf16, #tpu.memory_space<vmem>>, %arg3: memref<8x1xf32, #tpu.memory_space<vmem>>, %arg4: memref<8x1xf32, #tpu.memory_space<vmem>>, %arg5: memref<8x8xbf16, #tpu.memory_space<vmem>>, %arg6: memref<1x8x256xbf16, #tpu.memory_space<vmem>>) attributes {dimension_semantics = [#tpu.dimension_semantics<parallel>, #tpu.dimension_semantics<parallel>], iteration_bounds = array<i64: 2, 1>, scalar_prefetch = 0 : i64, scratch_operands = 0 : i64, tpu.core_type = #tpu.core_type<tc>, window_params = [{transform_indices = @transform_0, window_bounds = array<i64: 1, 8, 256>}, {pipeline_mode = #tpu.pipeline_mode<synchronous>, transform_indices = @transform_1, window_bounds = array<i64: 8, 1>}, {pipeline_mode = #tpu.pipeline_mode<synchronous>, transform_indices = @transform_2, window_bounds = array<i64: 8, 1>}, {pipeline_mode = #tpu.pipeline_mode<synchronous>, transform_indices = @transform_3, window_bounds = array<i64: 8, 8>}, {transform_indices = @transform_4, window_bounds = array<i64: 1, 8, 256>}]} {
    %c0 = arith.constant 0 : index
    %c0_0 = arith.constant 0 : index
    %0 = vector.load %arg5[%c0, %c0_0] : memref<8x8xbf16, #tpu.memory_space<vmem>>, vector<8x8xbf16>
    %c0_1 = arith.constant 0 : index
    %c0_2 = arith.constant 0 : index
    %1 = vector.load %arg3[%c0_1, %c0_2] : memref<8x1xf32, #tpu.memory_space<vmem>>, vector<8x1xf32>
    %c0_3 = arith.constant 0 : index
    %c0_4 = arith.constant 0 : index
    %2 = vector.load %arg4[%c0_3, %c0_4] : memref<8x1xf32, #tpu.memory_space<vmem>>, vector<8x1xf32>
    %c0_5 = arith.constant 0 : index
    %c0_6 = arith.constant 0 : index
    %c0_7 = arith.constant 0 : index
    %3 = vector.load %arg2[%c0_5, %c0_6, %c0_7] : memref<1x8x256xbf16, #tpu.memory_space<vmem>>, vector<1x8x256xbf16>
    %4 = vector.shape_cast %3 : vector<1x8x256xbf16> to vector<8x256xbf16>
    %5 = arith.extf %4 : vector<8x256xbf16> to vector<8x256xf32>
    %6 = vector.broadcast %1 : vector<8x1xf32> to vector<8x256xf32>
    %7 = arith.mulf %5, %6 : vector<8x256xf32>
    %8 = vector.broadcast %2 : vector<8x1xf32> to vector<8x256xf32>
    %9 = arith.addf %7, %8 : vector<8x256xf32>
    %cst = arith.constant 0.000000e+00 : f32
    %10 = vector.broadcast %cst : f32 to vector<8x256xf32>
    %11 = arith.maximumf %9, %10 : vector<8x256xf32>
    %12 = arith.truncf %11 : vector<8x256xf32> to vector<8x256xbf16>
    %cst_8 = arith.constant dense<0.000000e+00> : vector<8x256xf32>
    %13 = tpu.matmul %0, %12, %cst_8 {dimension_numbers = #tpu.dot_dimension_numbers<[1], [0], [0], [1], [0, 0, 1, 1], [], []>} : vector<8x8xbf16>, vector<8x256xbf16>, vector<8x256xf32> -> vector<8x256xf32>
    %14 = arith.truncf %13 : vector<8x256xf32> to vector<8x256xbf16>
    %c0_9 = arith.constant 0 : index
    %c0_10 = arith.constant 0 : index
    %c0_11 = arith.constant 0 : index
    %15 = vector.load %arg6[%c0_9, %c0_10, %c0_11] : memref<1x8x256xbf16, #tpu.memory_space<vmem>>, vector<1x8x256xbf16>
    %16 = vector.shape_cast %15 : vector<1x8x256xbf16> to vector<8x256xbf16>
    %17 = vector.shape_cast %14 : vector<8x256xbf16> to vector<1x8x256xbf16>
    tpu.vector_store %arg6[%c0_9, %c0_10, %c0_11], %17 {strides = array<i32>} : memref<1x8x256xbf16, #tpu.memory_space<vmem>>, vector<1x8x256xbf16>,
    return
  }
  func.func @transform_0(%arg0: i32, %arg1: i32) -> (i32, i32, i32) {
    %c0_i32 = arith.constant 0 : i32
    %c0_i32_0 = arith.constant 0 : i32
    return %arg0, %c0_i32, %arg1 : i32, i32, i32
  }
  func.func @transform_1(%arg0: i32, %arg1: i32) -> (i32, i32) {
    %c0_i32 = arith.constant 0 : i32
    %c0_i32_0 = arith.constant 0 : i32
    %c0_i32_1 = arith.constant 0 : i32
    return %c0_i32, %c0_i32_0 : i32, i32
  }
  func.func @transform_2(%arg0: i32, %arg1: i32) -> (i32, i32) {
    %c0_i32 = arith.constant 0 : i32
    %c0_i32_0 = arith.constant 0 : i32
    %c0_i32_1 = arith.constant 0 : i32
    return %c0_i32, %c0_i32_0 : i32, i32
  }
  func.func @transform_3(%arg0: i32, %arg1: i32) -> (i32, i32) {
    %c0_i32 = arith.constant 0 : i32
    %c0_i32_0 = arith.constant 0 : i32
    %c0_i32_1 = arith.constant 0 : i32
    return %c0_i32, %c0_i32_0 : i32, i32
  }
  func.func @transform_4(%arg0: i32, %arg1: i32) -> (i32, i32, i32) {
    %c0_i32 = arith.constant 0 : i32
    %c0_i32_0 = arith.constant 0 : i32
    return %arg0, %c0_i32, %arg1 : i32, i32, i32
  }
}

</mosaic_0001>

<bundles_post_ra>
// kernel: tpu_custom_call.1
= control target key start
LH: loop header
LB: loop body
LE: loop exit
PB: predicated region body
PF: predicated region fallthrough
CT: control target
= control target key end

     0   :  { %9 = vsyncpa [#allocation3], 0  ;;  %s710_s0 = inlined_call_operand.vmem [shape: bf16[2,8,256], index: 0, kind: input, shape index: {}]   ;;  %s711_s1 = inlined_call_operand.vmem [shape: f32[8,1], index: 1, kind: input, shape index: {}]   ;;  %s712_s2 = inlined_call_operand.vmem [shape: f32[8,1], index: 2, kind: input, shape index: {}]   ;;  %s713_s3 = inlined_call_operand.vmem [shape: bf16[8,8], index: 3, kind: input, shape index: {}]   ;;  %s714_s4 = inlined_call_operand.hbm [shape: bf16[2,8,256], index: 4, kind: output, shape index: {}]  }
   0x1   :  { %11 = vsyncpa [#allocation3 + $0x1], 0  ;;  %s589_s15 = smov 0   ;;  %s591_s16 = smov 0  }
   0x2   :  { %s593_s17 = smov 0   ;;  %s595_s18 = smov 0  }
   0x3   :  { %s597_s19 = smov 0   ;;  %s599_s20 = smov 0  }
   0x4 LB: > { %s406_s21 = sadd.s32 4294967295, %s560_s20   ;;  %s407_s22 = sadd.s32 4294967294, %s560_s20   ;;  %s560_s20 = sphi %s599_s20, %s17_s20   ;;  %s556_s19 = sphi %s597_s19, %s721_s19   ;;  %s552_s18 = sphi %s595_s18, %s720_s18   ;;  %s548_s17 = sphi %s593_s17, %s719_s17   ;;  %s544_s16 = sphi %s591_s16, %s718_s16   ;;  %s540_s15 = sphi %s589_s15, %s717_s15  }
   0x5   : > { %s29_s23 = sadd.s32 1, %s556_s19  ;;  %s129_s24 = sadd.s32 1, %s548_s17 }
   0x6   : > { %p31_p0 = scmp.ge.s32.totalorder %s29_s23, 2  ;;  %p139_p1 = scmp.ne.s32.totalorder %s548_s17, %s544_s16 }
   0x7   : > { %p140_p2 = scmp.eq.s32.totalorder %s406_s21, 1  ;;  %p145_p3 = scmp.ne.s32.totalorder %s544_s16, %s540_s15 }
   0x8   : > { %s723_s23 = smov (%p31_p0, %s29_s23), 0  ;;  %p146_p5 = scmp.eq.s32.totalorder %s407_s22, 1 }
   0x9   : > { %p629_p4 = por %p140_p2, %p139_p1  ;;  %s124_s26 = ssub.s32 %s556_s19, %s723_s23 }
   0xa   : > { %p410_p6 = scmp.ge.s32.totalorder %s560_s20, 1  ;;  %p127_p7 = scmp.eq.s32.totalorder %s124_s26, 0 }
   0xb   : > { %p636_p8 = por %p146_p5, %p145_p3  ;;  %p186_p9 = scmp.lt.s32.totalorder %s560_s20, 3 }
   0xc   : > { %s642_s28 = scalar_select %p127_p7, %s548_s17, %s129_s24  }
   0xd   : > { %p187_p10 = pnand %p410_p6, %p186_p9 }
   0xe   : > { %v229_v0 = vld [vmem:[%s711_s1] sm:$0xff] (!%p187_p10)  ;;  %v562_v1 = vmov (!%p187_p10), 0   ;;  %p217_p11 = scmp.lt.s32.totalorder (!%p187_p10), %s552_s18, 1  ;;  %vm256_vm0 = vcmask (!%p187_p10), 1043456   ;;  %vm252_vm1 = vcmask (!%p187_p10), 64512   ;;  %s213_s14 = sand.u32 (!%p187_p10), 1, %s544_s16  }
   0xf   : > { %190 = sbr.rel (%p187_p10) target bundleno = 387 (0x183), region = 36  ;;  %481 = vset.pattern.permute.xlu0 (!%p187_p10), %v562_v1  ;;  %295 = vmatprep.mubr.bf16.mxu0 (!%p187_p10), %v562_v1  ;;  %v230_v2 = vld [vmem:[%s712_s2] sm:$0xff] (!%p187_p10)  ;;  %s411_s21 = sshll.u32 (!%p187_p10), %s213_s14, 3 }
  0x10   : > { %236 = vperm.xlu0 (!%p187_p10), %481, %v229_v0   ;;  %v228_v17 = vld [vmem:[%s713_s3] sm:$0xf] (!%p187_p10)  ;;  %s424_s22 = sshll.u32 (!%p187_p10), %s552_s18, 7  ;;  %s215_s24 = scalar_lea.vmem (!%p187_p10), [#allocation2], %s411_s21 }
  0x11   : > { %s330_s26 = sshll.u32 (!%p187_p10), %s215_s24, 4  ;;  %s663_s5 = scalar_lea.hbm (!%p187_p10), %s714_s4, %s424_s22  ;;  %s665_s26 = int_to_ptr.vmem [resolvable:$true] %s330_s26 }
  0x12   : > { %s314_s6 = scalar_lea.sflag (!%p187_p10), [#allocation3], %s213_s14 }
  0x14   : > { %243 = vperm.xlu0 (!%p187_p10), %481, %v230_v2  }
  0x16   : > { %s218_s7 = scalar_select %p217_p11, %s552_s18, 1 }
  0x17   : > { %s482_s18 = scalar_lea.vmem %s665_s26, 128 }
  0x18   : > { %s422_s8 = sshll.u32 %s218_s7, 3  ;;  %p483_p12 = scmp.ne.s32.totalorder %s665_s26, %s482_s18 }
  0x19   : > { %s224_s11 = scalar_lea.vmem %s710_s0, %s422_s8  ;;  %s563_s7 = smov [#allocation2]  }
  0x1a   : > { %v231_v3 = vld [vmem:[%s224_s11] sm:$0xff]  ;;  %p484_p13 = pnand %p483_p12, %p629_p4  ;;  %s486_s8 = sshll.u32 %s563_s7, 4  ;;  %s487_s8 = int_to_ptr.vmem [resolvable:$false] %s486_s8 }
  0x1b   : > { %v232_v4 = vunpack.c.l.bf16 %v231_v3  ;;  %v233_v5 = vunpack.c.h.bf16 %v231_v3  ;;  %s488_s9 = scalar_lea.vmem %s487_s8, 256  ;;  %p489_p1 = scmp.lt.s32.totalorder %s665_s26, %s487_s8 }
  0x1c   : > { %p485_p0 = pneg %p484_p13  ;;  %p490_p2 = scmp.lt.s32.totalorder %s488_s9, %s482_s18 }
  0x1e   : > { %p491_p3 = por %p490_p2, %p489_p1 }
  0x20   : > { %p492_p5 = pnand %p491_p3, %p485_p0 }
  0x8f   : > { %v237_v6 = vpop.permute.xlu0 %236 }
  0x90   : > { %v239_v7 = vmul.f32 %v237_v6, %v232_v4  ;;  %v240_v8 = vmul.f32 %v237_v6, %v233_v5 }
  0x93   : > { %v244_v9 = vpop.permute.xlu0 %243 }
  0x94   : > { %v246_v10 = vadd.f32 %v244_v9, %v239_v7  ;;  %v247_v11 = vadd.f32 %v244_v9, %v240_v8 }
  0x96   : > { %v248_v12 = vmax.f32 %v246_v10, 0.0  ;;  %v249_v13 = vmax.f32 %v247_v11, 0.0 }
  0x98   : > { %v250_v14 = vpack.c.bf16 %v248_v12, %v248_v12  ;;  %v251_v15 = vpack.c.bf16 %v249_v13, %v249_v13 }
  0x9a   : > { %414 = vmatprep.subr.msk.bf16.mxu0 %vm256_vm0, %v251_v15  ;;  %v258_v16 = vsel %vm256_vm0, %v250_v14, 0 }
  0x9b   : > { %264 = vmatpush1.bf16.msra.mxu0 %v258_v16 }
  0x9e   : > { %415 = vmatmul.mubr.msk.bf16.vlgmr.msra.gmra.mrb[0].mxu0 %vm252_vm1, %v228_v17 }
 0x171   : > { %v297_v18 = vpop.f32.mrb[0].mxu0 }
 0x172   : > { %v299_v19 = vpop.f32.mrb[1].mxu0 }
 0x173   : > { %v423_v20 = vpack.c.bf16 %v299_v19, %v297_v18  ;;  %v301_v21 = vpop.f32.mrb[2].mxu0 }
 0x174   : > { %v302_v22 = vpop.f32.mrb[3].mxu0 }
 0x175   : > { %312 = vst [vmem:[%s215_s24] sm:$0xff] %v423_v20 }
 0x176   : > { %495 = shalt.err (!%p492_p5)
}
 0x177   : > { %s496_s10 = scalar_lea.hbm %s663_s5, 128  ;;  %s500_s13 = scalar_lea.hbm %s714_s4, 256 }
 0x178   : > { %p497_p6 = scmp.ne.s32.totalorder %s663_s5, %s496_s10  ;;  %p501_p10 = scmp.lt.u32.totalorder %s663_s5, %s714_s4 }
 0x179   : > { %p502_p11 = scmp.lt.u32.totalorder %s500_s13, %s496_s10  ;;  %p504_p13 = scmp.lt.u32.totalorder %s496_s10, %s663_s5 }
 0x17a   : > { %p498_p7 = pnand %p497_p6, %p629_p4 }
 0x17b   : > { %p503_p12 = por %p502_p11, %p501_p10 }
 0x17c   : > { %p499_p9 = pneg %p498_p7 }
 0x17d   : > { %p505_p0 = por %p504_p13, %p503_p12 }
 0x17f   : > { %p506_p1 = pnand %p505_p0, %p499_p9 }
 0x181   : > { %509 = shalt.err (!%p506_p1)
}
 0x182   : > { %425 = dma.vmem_to_hbm [thread:$0]  (%p629_p4), %s665_s26, 128, %s663_s5, %s314_s6  }
 0x183 PF: > { %p431_p2 = scmp.ge.s32.totalorder %s560_s20, 2  ;;  %s342_s22 = sand.u32 1, %s540_s15  }
 0x184   : > { %s343_s24 = scalar_lea.sflag [#allocation3], %s342_s22 }
 0x185   : > { %p428_p3 = pnand %p431_p2, %p636_p8 }
 0x187   : > { %535 = dma.done.wait (!%p428_p3), %s343_s24, 128  }
 0x188   : > { %537 = vsyncadd (!%p428_p3), %s343_s24, 4294967168  ;;  %s17_s20 = sadd.s32 1, %s560_s20   ;;  %s717_s15 = smov %s544_s16 }
 0x189   : > { %p14_p5 = scmp.ge.s32.totalorder %s17_s20, 4   ;;  %s718_s16 = smov %s548_s17 }
 0x18a   : > { %s719_s17 = smov %s642_s28  ;;  %s720_s18 = smov %s556_s19 }
 0x18b   : > { %s721_s19 = smov %s723_s23  ;;  %16 = sbr.rel (!%p14_p5) target bundleno = 4 (0x4), region = 71 }
 0x192   :  { %348 = vsyncpa [#allocation3], 1 }
 0x193   :  { %350 = vsyncpa [#allocation3 + $0x1], 1 }

</bundles_post_ra>
